<compile_context>
chip_gen: v7x
topology: tpu7x:2x2x1
jax: 0.10.0
libtpu: 0.0.40
codegen_flags: <defaults>
</compile_context>

<pallas_src>
import jax
import jax.numpy as jnp
from jax.experimental import pallas as pl
from jax.experimental.pallas import tpu as pltpu


def _critic_kernel(state_ref, action_ref,
                   w1_ref, b1_ref,
                   w2s_ref, w2a_ref, b2_ref,
                   w3_ref, b3_ref,
                   w4_ref, b4_ref,
                   out_ref):
    f32 = jnp.float32

    # fcs1 + relu (MXU, f32 accumulation).
    xs = jnp.dot(state_ref[...], w1_ref[...], preferred_element_type=f32)
    xs = jnp.maximum(xs + b1_ref[...].astype(f32), 0.0)

    # fc2 over concat([xs, action]) == xs @ W2s + action @ W2a + b2.
    x = jnp.dot(xs.astype(w2s_ref.dtype), w2s_ref[...],
                preferred_element_type=f32)
    x = x + b2_ref[...].astype(f32)
    # K = action_size (tiny) contraction folded onto the VPU as broadcast
    # FMAs instead of a mostly-padded MXU pass.  Loop bound is static.
    act = action_ref[...].astype(f32)
    w2a = w2a_ref[...].astype(f32)
    for k in range(act.shape[1]):
        x = x + act[:, k:k + 1] * w2a[k:k + 1, :]
    x = jnp.maximum(x, 0.0)

    # fc3 + relu.
    x = jnp.dot(x.astype(w3_ref.dtype), w3_ref[...], preferred_element_type=f32)
    x = jnp.maximum(x + b3_ref[...].astype(f32), 0.0)

    # fc4 (out_features = 1): VPU multiply + lane reduction, stored lane-dense
    # as a (1, TB) row (batch on the lane axis).
    q = jnp.sum(x * w4_ref[...].astype(f32), axis=-1)          # (TB,)
    out_ref[...] = (q[None, :] + b4_ref[...].astype(f32)).astype(out_ref.dtype)


def critic_forward(state, action, params, *, block_b=512,
                   compute_dtype=jnp.float32):
    """Critic forward pass as one batch-tiled Pallas kernel call.

    params = (w1, b1, w2s, w2a, b2, w3, b3, w4_row, b4) with weights stored
    as (in_features, out_features); w4_row is (1, fc3_units).
    Returns q of shape (B, 1) in float32.
    """
    B = state.shape[0]
    state = state.astype(compute_dtype)
    action = action.astype(compute_dtype)
    params = tuple(jnp.asarray(p, compute_dtype) for p in params)
    w1, b1, w2s, w2a, b2, w3, b3, w4r, b4 = params

    # Batch tile: multiple of 8 sublanes; TB=512 hits ~85% of HBM roofline.
    if B >= block_b:
        tb = block_b
    else:
        tb = max(8, ((B + 7) // 8) * 8)
    b_pad = ((B + tb - 1) // tb) * tb
    if b_pad != B:
        state = jnp.pad(state, ((0, b_pad - B), (0, 0)))
        action = jnp.pad(action, ((0, b_pad - B), (0, 0)))

    S, H1 = w1.shape
    A, H2 = w2a.shape
    H3 = w3.shape[1]

    def resident(shape):
        # Full-array block + constant block index -> weight stays in VMEM
        # across grid steps (no re-DMA).
        return pl.BlockSpec(shape, lambda i: (0, 0))

    out = pl.pallas_call(
        _critic_kernel,
        out_shape=jax.ShapeDtypeStruct((1, b_pad), jnp.float32),
        grid=(b_pad // tb,),
        in_specs=[
            pl.BlockSpec((tb, S), lambda i: (i, 0)),   # state tile
            pl.BlockSpec((tb, A), lambda i: (i, 0)),   # action tile
            resident((S, H1)), resident((1, H1)),
            resident((H1, H2)), resident((A, H2)), resident((1, H2)),
            resident((H2, H3)), resident((1, H3)),
            resident((1, H3)), resident((1, 1)),
        ],
        # Lane-dense output slab: one (1, tb) row per batch tile.
        out_specs=pl.BlockSpec((1, tb), lambda i: (0, i)),
        compiler_params=pltpu.CompilerParams(
            dimension_semantics=("parallel",)),  # v7x: shard tiles across TCs
    )(state, action, *params)

    return out.reshape(b_pad, 1)[:B]


def init_critic_params(key, state_size, action_size,
                       fcs1_units=64, fc2_units=32, fc3_units=32):
    """Init mirroring Critic.reset_parameters() + nn.Linear default bias init.

    Weights are stored transposed vs PyTorch ((in_features, out_features)),
    fc2's weight is split into its xs / action parts (fuses the concat), and
    fc4's weight is stored as a (1, fc3_units) row for the VPU reduction.
    Returns (kernel_params, dense_params); dense_params keep the un-split
    layout for the pure-JAX reference.
    """
    ks = jax.random.split(key, 8)

    def u(k, shape, lim):
        return jax.random.uniform(k, shape, jnp.float32, -lim, lim)

    # reset_parameters(): limits use weight.size()[0] (== out_features).
    wlim1 = fcs1_units ** -0.5
    wlim2 = fc2_units ** -0.5
    wlim3 = fc3_units ** -0.5
    # Biases keep nn.Linear's default U(+-1/sqrt(in_features)) init
    # (reset_parameters does not touch them).
    blim1 = state_size ** -0.5
    blim2 = (fcs1_units + action_size) ** -0.5
    blim3 = fc2_units ** -0.5
    blim4 = fc3_units ** -0.5

    w1 = u(ks[0], (state_size, fcs1_units), wlim1)
    b1 = u(ks[1], (1, fcs1_units), blim1)
    w2 = u(ks[2], (fcs1_units + action_size, fc2_units), wlim2)
    b2 = u(ks[3], (1, fc2_units), blim2)
    w3 = u(ks[4], (fc2_units, fc3_units), wlim3)
    b3 = u(ks[5], (1, fc3_units), blim3)
    w4 = u(ks[6], (fc3_units, 1), 3e-3)
    b4 = u(ks[7], (1, 1), blim4)

    w2s = w2[:fcs1_units, :]       # applies to xs
    w2a = w2[fcs1_units:, :]       # applies to action
    w4r = w4.T                     # (1, fc3_units)

    kernel_params = (w1, b1, w2s, w2a, b2, w3, b3, w4r, b4)
    dense_params = (w1, b1, w2, b2, w3, b3, w4, b4)
    return kernel_params, dense_params


def critic_reference(state, action, dense_params):
    """Pure-JAX reference for validation."""
    w1, b1, w2, b2, w3, b3, w4, b4 = dense_params
    xs = jax.nn.relu(state @ w1 + b1)
    x = jnp.concatenate([xs, action], axis=1)
    x = jax.nn.relu(x @ w2 + b2)
    x = jax.nn.relu(x @ w3 + b3)
    return x @ w4 + b4


if __name__ == "__main__":
    key = jax.random.PRNGKey(0)
    k_params, k_s1, k_a1, k_s2, k_a2 = jax.random.split(key, 5)

    state_size, action_size = 24, 4
    kernel_params, dense_params = init_critic_params(
        k_params, state_size, action_size)

    # Small demo shape (single tile).
    B = 8
    state = jax.random.normal(k_s1, (B, state_size), jnp.float32)
    action = jax.random.normal(k_a1, (B, action_size), jnp.float32)
    q = jax.block_until_ready(critic_forward(state, action, kernel_params))
    q_ref = critic_reference(state, action, dense_params)
    assert q.shape == (B, 1)
    assert jnp.allclose(q, q_ref, atol=1e-4, rtol=1e-4), (q, q_ref)

    # Larger batch exercising the batch grid (TB=512 tiles) + padding path.
    B2 = 600
    state2 = jax.random.normal(k_s2, (B2, state_size), jnp.float32)
    action2 = jax.random.normal(k_a2, (B2, action_size), jnp.float32)
    q2 = jax.block_until_ready(critic_forward(state2, action2, kernel_params))
    q2_ref = critic_reference(state2, action2, dense_params)
    assert q2.shape == (B2, 1)
    assert jnp.allclose(q2, q2_ref, atol=1e-4, rtol=1e-4), (q2, q2_ref)

    print("KERNEL_OK")
</pallas_src>

<mosaic_0001>
module attributes {stable_mosaic.version = 11 : i64} {
  func.func @_critic_kernel(%arg0: i32, %arg1: memref<8x24xf32, #tpu.memory_space<vmem>>, %arg2: memref<8x4xf32, #tpu.memory_space<vmem>>, %arg3: memref<24x64xf32, #tpu.memory_space<vmem>>, %arg4: memref<1x64xf32, #tpu.memory_space<vmem>>, %arg5: memref<64x32xf32, #tpu.memory_space<vmem>>, %arg6: memref<4x32xf32, #tpu.memory_space<vmem>>, %arg7: memref<1x32xf32, #tpu.memory_space<vmem>>, %arg8: memref<32x32xf32, #tpu.memory_space<vmem>>, %arg9: memref<1x32xf32, #tpu.memory_space<vmem>>, %arg10: memref<1x32xf32, #tpu.memory_space<vmem>>, %arg11: memref<1x1xf32, #tpu.memory_space<vmem>>, %arg12: memref<1x8xf32, #tpu.memory_space<vmem>>) attributes {dimension_semantics = [#tpu.dimension_semantics<parallel>], iteration_bounds = array<i64: 1>, scalar_prefetch = 0 : i64, scratch_operands = 0 : i64, tpu.core_type = #tpu.core_type<tc>, window_params = [{transform_indices = @transform_0, window_bounds = array<i64: 8, 24>}, {transform_indices = @transform_1, window_bounds = array<i64: 8, 4>}, {pipeline_mode = #tpu.pipeline_mode<synchronous>, transform_indices = @transform_2, window_bounds = array<i64: 24, 64>}, {pipeline_mode = #tpu.pipeline_mode<synchronous>, transform_indices = @transform_3, window_bounds = array<i64: 1, 64>}, {pipeline_mode = #tpu.pipeline_mode<synchronous>, transform_indices = @transform_4, window_bounds = array<i64: 64, 32>}, {pipeline_mode = #tpu.pipeline_mode<synchronous>, transform_indices = @transform_5, window_bounds = array<i64: 4, 32>}, {pipeline_mode = #tpu.pipeline_mode<synchronous>, transform_indices = @transform_6, window_bounds = array<i64: 1, 32>}, {pipeline_mode = #tpu.pipeline_mode<synchronous>, transform_indices = @transform_7, window_bounds = array<i64: 32, 32>}, {pipeline_mode = #tpu.pipeline_mode<synchronous>, transform_indices = @transform_8, window_bounds = array<i64: 1, 32>}, {pipeline_mode = #tpu.pipeline_mode<synchronous>, transform_indices = @transform_9, window_bounds = array<i64: 1, 32>}, {pipeline_mode = #tpu.pipeline_mode<synchronous>, transform_indices = @transform_10, window_bounds = array<i64: 1, 1>}, {transform_indices = @transform_11, window_bounds = array<i64: 1, 8>}]} {
    %c0 = arith.constant 0 : index
    %c0_0 = arith.constant 0 : index
    %0 = vector.load %arg1[%c0, %c0_0] : memref<8x24xf32, #tpu.memory_space<vmem>>, vector<8x24xf32>
    %c0_1 = arith.constant 0 : index
    %c0_2 = arith.constant 0 : index
    %1 = vector.load %arg3[%c0_1, %c0_2] : memref<24x64xf32, #tpu.memory_space<vmem>>, vector<24x64xf32>
    %cst = arith.constant dense<0.000000e+00> : vector<8x64xf32>
    %2 = tpu.matmul %0, %1, %cst {dimension_numbers = #tpu.dot_dimension_numbers<[1], [0], [0], [1], [0, 0, 1, 1], [], []>} : vector<8x24xf32>, vector<24x64xf32>, vector<8x64xf32> -> vector<8x64xf32>
    %c0_3 = arith.constant 0 : index
    %c0_4 = arith.constant 0 : index
    %3 = vector.load %arg4[%c0_3, %c0_4] : memref<1x64xf32, #tpu.memory_space<vmem>>, vector<1x64xf32>
    %4 = vector.broadcast %3 : vector<1x64xf32> to vector<8x64xf32>
    %5 = arith.addf %2, %4 : vector<8x64xf32>
    %cst_5 = arith.constant 0.000000e+00 : f32
    %6 = vector.broadcast %cst_5 : f32 to vector<8x64xf32>
    %7 = arith.maximumf %5, %6 : vector<8x64xf32>
    %c0_6 = arith.constant 0 : index
    %c0_7 = arith.constant 0 : index
    %8 = vector.load %arg5[%c0_6, %c0_7] : memref<64x32xf32, #tpu.memory_space<vmem>>, vector<64x32xf32>
    %cst_8 = arith.constant dense<0.000000e+00> : vector<8x32xf32>
    %9 = tpu.matmul %7, %8, %cst_8 {dimension_numbers = #tpu.dot_dimension_numbers<[1], [0], [0], [1], [0, 0, 1, 1], [], []>} : vector<8x64xf32>, vector<64x32xf32>, vector<8x32xf32> -> vector<8x32xf32>
    %c0_9 = arith.constant 0 : index
    %c0_10 = arith.constant 0 : index
    %10 = vector.load %arg7[%c0_9, %c0_10] : memref<1x32xf32, #tpu.memory_space<vmem>>, vector<1x32xf32>
    %11 = vector.broadcast %10 : vector<1x32xf32> to vector<8x32xf32>
    %12 = arith.addf %9, %11 : vector<8x32xf32>
    %c0_11 = arith.constant 0 : index
    %c0_12 = arith.constant 0 : index
    %13 = vector.load %arg2[%c0_11, %c0_12] : memref<8x4xf32, #tpu.memory_space<vmem>>, vector<8x4xf32>
    %c0_13 = arith.constant 0 : index
    %c0_14 = arith.constant 0 : index
    %14 = vector.load %arg6[%c0_13, %c0_14] : memref<4x32xf32, #tpu.memory_space<vmem>>, vector<4x32xf32>
    %15 = vector.extract_strided_slice %13 {offsets = [0, 0], sizes = [8, 1], strides = [1, 1]} : vector<8x4xf32> to vector<8x1xf32>
    %16 = vector.extract_strided_slice %14 {offsets = [0, 0], sizes = [1, 32], strides = [1, 1]} : vector<4x32xf32> to vector<1x32xf32>
    %17 = vector.broadcast %15 : vector<8x1xf32> to vector<8x32xf32>
    %18 = vector.broadcast %16 : vector<1x32xf32> to vector<8x32xf32>
    %19 = arith.mulf %17, %18 : vector<8x32xf32>
    %20 = arith.addf %12, %19 : vector<8x32xf32>
    %21 = vector.extract_strided_slice %13 {offsets = [0, 1], sizes = [8, 1], strides = [1, 1]} : vector<8x4xf32> to vector<8x1xf32>
    %22 = vector.extract_strided_slice %14 {offsets = [1, 0], sizes = [1, 32], strides = [1, 1]} : vector<4x32xf32> to vector<1x32xf32>
    %23 = vector.broadcast %21 : vector<8x1xf32> to vector<8x32xf32>
    %24 = vector.broadcast %22 : vector<1x32xf32> to vector<8x32xf32>
    %25 = arith.mulf %23, %24 : vector<8x32xf32>
    %26 = arith.addf %20, %25 : vector<8x32xf32>
    %27 = vector.extract_strided_slice %13 {offsets = [0, 2], sizes = [8, 1], strides = [1, 1]} : vector<8x4xf32> to vector<8x1xf32>
    %28 = vector.extract_strided_slice %14 {offsets = [2, 0], sizes = [1, 32], strides = [1, 1]} : vector<4x32xf32> to vector<1x32xf32>
    %29 = vector.broadcast %27 : vector<8x1xf32> to vector<8x32xf32>
    %30 = vector.broadcast %28 : vector<1x32xf32> to vector<8x32xf32>
    %31 = arith.mulf %29, %30 : vector<8x32xf32>
    %32 = arith.addf %26, %31 : vector<8x32xf32>
    %33 = vector.extract_strided_slice %13 {offsets = [0, 3], sizes = [8, 1], strides = [1, 1]} : vector<8x4xf32> to vector<8x1xf32>
    %34 = vector.extract_strided_slice %14 {offsets = [3, 0], sizes = [1, 32], strides = [1, 1]} : vector<4x32xf32> to vector<1x32xf32>
    %35 = vector.broadcast %33 : vector<8x1xf32> to vector<8x32xf32>
    %36 = vector.broadcast %34 : vector<1x32xf32> to vector<8x32xf32>
    %37 = arith.mulf %35, %36 : vector<8x32xf32>
    %38 = arith.addf %32, %37 : vector<8x32xf32>
    %cst_15 = arith.constant 0.000000e+00 : f32
    %39 = vector.broadcast %cst_15 : f32 to vector<8x32xf32>
    %40 = arith.maximumf %38, %39 : vector<8x32xf32>
    %c0_16 = arith.constant 0 : index
    %c0_17 = arith.constant 0 : index
    %41 = vector.load %arg8[%c0_16, %c0_17] : memref<32x32xf32, #tpu.memory_space<vmem>>, vector<32x32xf32>
    %cst_18 = arith.constant dense<0.000000e+00> : vector<8x32xf32>
    %42 = tpu.matmul %40, %41, %cst_18 {dimension_numbers = #tpu.dot_dimension_numbers<[1], [0], [0], [1], [0, 0, 1, 1], [], []>} : vector<8x32xf32>, vector<32x32xf32>, vector<8x32xf32> -> vector<8x32xf32>
    %c0_19 = arith.constant 0 : index
    %c0_20 = arith.constant 0 : index
    %43 = vector.load %arg9[%c0_19, %c0_20] : memref<1x32xf32, #tpu.memory_space<vmem>>, vector<1x32xf32>
    %44 = vector.broadcast %43 : vector<1x32xf32> to vector<8x32xf32>
    %45 = arith.addf %42, %44 : vector<8x32xf32>
    %cst_21 = arith.constant 0.000000e+00 : f32
    %46 = vector.broadcast %cst_21 : f32 to vector<8x32xf32>
    %47 = arith.maximumf %45, %46 : vector<8x32xf32>
    %c0_22 = arith.constant 0 : index
    %c0_23 = arith.constant 0 : index
    %48 = vector.load %arg10[%c0_22, %c0_23] : memref<1x32xf32, #tpu.memory_space<vmem>>, vector<1x32xf32>
    %49 = vector.broadcast %48 : vector<1x32xf32> to vector<8x32xf32>
    %50 = arith.mulf %47, %49 : vector<8x32xf32>
    %cst_24 = arith.constant dense<0.000000e+00> : vector<8xf32>
    %51 = vector.multi_reduction <add>, %50, %cst_24 [1] : vector<8x32xf32> to vector<8xf32>
    %52 = vector.shape_cast %51 : vector<8xf32> to vector<1x8xf32>
    %c0_25 = arith.constant 0 : index
    %c0_26 = arith.constant 0 : index
    %53 = vector.load %arg11[%c0_25, %c0_26] : memref<1x1xf32, #tpu.memory_space<vmem>>, vector<1x1xf32>
    %54 = vector.broadcast %53 : vector<1x1xf32> to vector<1x8xf32>
    %55 = arith.addf %52, %54 : vector<1x8xf32>
    %c0_27 = arith.constant 0 : index
    %c0_28 = arith.constant 0 : index
    %56 = vector.load %arg12[%c0_27, %c0_28] : memref<1x8xf32, #tpu.memory_space<vmem>>, vector<1x8xf32>
    tpu.vector_store %arg12[%c0_27, %c0_28], %55 {strides = array<i32>} : memref<1x8xf32, #tpu.memory_space<vmem>>, vector<1x8xf32>,
    return
  }
  func.func @transform_0(%arg0: i32) -> (i32, i32) {
    %c0_i32 = arith.constant 0 : i32
    %c0_i32_0 = arith.constant 0 : i32
    return %arg0, %c0_i32 : i32, i32
  }
  func.func @transform_1(%arg0: i32) -> (i32, i32) {
    %c0_i32 = arith.constant 0 : i32
    %c0_i32_0 = arith.constant 0 : i32
    return %arg0, %c0_i32 : i32, i32
  }
  func.func @transform_2(%arg0: i32) -> (i32, i32) {
    %c0_i32 = arith.constant 0 : i32
    %c0_i32_0 = arith.constant 0 : i32
    %c0_i32_1 = arith.constant 0 : i32
    return %c0_i32, %c0_i32_0 : i32, i32
  }
  func.func @transform_3(%arg0: i32) -> (i32, i32) {
    %c0_i32 = arith.constant 0 : i32
    %c0_i32_0 = arith.constant 0 : i32
    %c0_i32_1 = arith.constant 0 : i32
    return %c0_i32, %c0_i32_0 : i32, i32
  }
  func.func @transform_4(%arg0: i32) -> (i32, i32) {
    %c0_i32 = arith.constant 0 : i32
    %c0_i32_0 = arith.constant 0 : i32
    %c0_i32_1 = arith.constant 0 : i32
    return %c0_i32, %c0_i32_0 : i32, i32
  }
  func.func @transform_5(%arg0: i32) -> (i32, i32) {
    %c0_i32 = arith.constant 0 : i32
    %c0_i32_0 = arith.constant 0 : i32
    %c0_i32_1 = arith.constant 0 : i32
    return %c0_i32, %c0_i32_0 : i32, i32
  }
  func.func @transform_6(%arg0: i32) -> (i32, i32) {
    %c0_i32 = arith.constant 0 : i32
    %c0_i32_0 = arith.constant 0 : i32
    %c0_i32_1 = arith.constant 0 : i32
    return %c0_i32, %c0_i32_0 : i32, i32
  }
  func.func @transform_7(%arg0: i32) -> (i32, i32) {
    %c0_i32 = arith.constant 0 : i32
    %c0_i32_0 = arith.constant 0 : i32
    %c0_i32_1 = arith.constant 0 : i32
    return %c0_i32, %c0_i32_0 : i32, i32
  }
  func.func @transform_8(%arg0: i32) -> (i32, i32) {
    %c0_i32 = arith.constant 0 : i32
    %c0_i32_0 = arith.constant 0 : i32
    %c0_i32_1 = arith.constant 0 : i32
    return %c0_i32, %c0_i32_0 : i32, i32
  }
  func.func @transform_9(%arg0: i32) -> (i32, i32) {
    %c0_i32 = arith.constant 0 : i32
    %c0_i32_0 = arith.constant 0 : i32
    %c0_i32_1 = arith.constant 0 : i32
    return %c0_i32, %c0_i32_0 : i32, i32
  }
  func.func @transform_10(%arg0: i32) -> (i32, i32) {
    %c0_i32 = arith.constant 0 : i32
    %c0_i32_0 = arith.constant 0 : i32
    %c0_i32_1 = arith.constant 0 : i32
    return %c0_i32, %c0_i32_0 : i32, i32
  }
  func.func @transform_11(%arg0: i32) -> (i32, i32) {
    %c0_i32 = arith.constant 0 : i32
    %c0_i32_0 = arith.constant 0 : i32
    return %c0_i32, %arg0 : i32, i32
  }
}

</mosaic_0001>

<bundles_post_ra>
// kernel: tpu_custom_call.1
= control target key start
LH: loop header
LB: loop body
LE: loop exit
PB: predicated region body
PF: predicated region fallthrough
CT: control target
= control target key end

     0   :  { %s666_s0 = inlined_call_operand.vmem [shape: f32[8,24], index: 0, kind: input, shape index: {}]   ;;  %s667_s1 = inlined_call_operand.vmem [shape: f32[8,4], index: 1, kind: input, shape index: {}]   ;;  %s668_s2 = inlined_call_operand.vmem [shape: f32[24,64], index: 2, kind: input, shape index: {}]   ;;  %s669_s3 = inlined_call_operand.vmem [shape: f32[1,64], index: 3, kind: input, shape index: {}]   ;;  %s670_s4 = inlined_call_operand.vmem [shape: f32[64,32], index: 4, kind: input, shape index: {}]   ;;  %s671_s5 = inlined_call_operand.vmem [shape: f32[4,32], index: 5, kind: input, shape index: {}]   ;;  %s672_s6 = inlined_call_operand.vmem [shape: f32[1,32], index: 6, kind: input, shape index: {}]   ;;  %s673_s7 = inlined_call_operand.vmem [shape: f32[32,32], index: 7, kind: input, shape index: {}]   ;;  %s674_s8 = inlined_call_operand.vmem [shape: f32[1,32], index: 8, kind: input, shape index: {}]   ;;  %s675_s9 = inlined_call_operand.vmem [shape: f32[1,32], index: 9, kind: input, shape index: {}]   ;;  %s676_s10 = inlined_call_operand.<no memory space> [shape: f32[1,1], index: 10, kind: input, shape index: {}]   ;;  %s677_s11 = inlined_call_operand.hbm [shape: f32[1,8], index: 11, kind: output, shape index: {}]  }
   0x1   :  { %v16_v0 = vstv %s676_s10 }
   0x2   :  { %17 = vst [vmem:[#allocation2] sm:$0x1] %v16_v0 }
   0x3   :  { %v42_v1 = vld [vmem:[%s668_s2] sm:$0xff]  ;;  %v43_v2 = vld [vmem:[%s668_s2 + $0x8] sm:$0xff]  ;;  %v514_v3 = vmov 0.0|0.0   ;;  %vm515_vm0 = vmmov 0   ;;  %v516_v5 = vmov 0.0   ;;  %v129_v9 = vld [vmem:[%s670_s4 + $0x10] sm:$0xff] }
   0x4   :  { %456 = vmatprep.subr.bf16.mxu0 %v514_v3  ;;  %v457_v4 = vpack.c.bf16 %v43_v2, %v42_v1  ;;  %423 = vmatprep.mubr.msk.f32.mxu0 %vm515_vm0, %v516_v5  ;;  %v127_v6 = vld [vmem:[%s670_s4] sm:$0xff]  ;;  %v128_v7 = vld [vmem:[%s670_s4 + $0x8] sm:$0xff]  ;;  %v130_v10 = vld [vmem:[%s670_s4 + $0x18] sm:$0xff] }
   0x5   :  { %459 = vmatprep.subr.bf16.mxu1 %v514_v3  ;;  %v460_v8 = vpack.c.bf16 %v128_v7, %v127_v6  ;;  %442 = vmatprep.mubr.msk.f32.mxu1 %vm515_vm0, %v516_v5 }
   0x6   :  { %458 = vmatpush3.bf16.msra.mxu0 %v457_v4 }
   0x7   :  { %18 = vsyncpa [#allocation4], 0  ;;  %421 = vmatprep.subr.mxu0 %v516_v5  ;;  %v44_v11 = vld [vmem:[%s668_s2 + $0x10] sm:$0xff]  ;;  %461 = vmatpush3.bf16.msra.mxu1 %v460_v8  ;;  %v463_v12 = vpack.c.bf16 %v130_v10, %v129_v9  ;;  %v41_v13 = vld [vmem:[%s666_s0] sm:$0xff]  ;;  %vm52_vm1 = vcmask 195584   ;;  %v517_v21 = vmov 0   ;;  %v223_v36 = vlaneseq }
   0x8   :  { %462 = vmatprep.subr.bf16.mxu1 %v514_v3  ;;  %v131_v14 = vld [vmem:[%s670_s4 + $0x20] sm:$0xff]  ;;  %v132_v15 = vld [vmem:[%s670_s4 + $0x28] sm:$0xff]  ;;  %v133_v17 = vld [vmem:[%s670_s4 + $0x30] sm:$0xff]  ;;  %485 = vset.pattern.permute.xlu0 %v517_v21  ;;  %v518_v22 = vmov 2   ;;  %v519_v23 = vmov 1   ;;  %v520_v24 = vmov 3  }
   0x9   :  { %v466_v16 = vpack.c.bf16 %v132_v15, %v131_v14  ;;  %v134_v18 = vld [vmem:[%s670_s4 + $0x38] sm:$0xff]  ;;  %v216_v20 = vld [vmem:[%s667_s1] sm:$0xff]  ;;  %487 = vset.pattern.permute.xlu1 %v518_v22  ;;  %vm142_vm2 = vcmask 523264   ;;  %v261_v31 = vld [vmem:[%s673_s7 + $0x8] sm:$0xff]  ;;  %v224_v37 = vshrl.u32 %v223_v36, 7  ;;  %vm271_vm3 = vcmask 261120  }
   0xa   :  { %422 = vmatpush3.msra.mxu0 %v44_v11  ;;  %v469_v19 = vpack.c.bf16 %v134_v18, %v133_v17  ;;  %220 = vperm.xlu0 %485, %v216_v20   ;;  %v392_v25 = vld [vmem:[%s669_s3] ss:$0 sm:$0xff]  ;;  %v262_v33 = vld [vmem:[%s673_s7 + $0x10] sm:$0xff]  ;;  %v263_v34 = vld [vmem:[%s673_s7 + $0x18] sm:$0xff]  ;;  %v370_v10 = vand.u32 127, %v223_v36  ;;  %s521_s15 = smov [#allocation3]  }
   0xb   :  { %424 = vmatmul.mubr.msk.f32.vlgmr.msra.gmra.mrb[0].mxu0 %vm52_vm1, %v41_v13  ;;  %464 = vmatpush3.bf16.msra.mxu1 %v463_v12  ;;  %v260_v30 = vld [vmem:[%s673_s7] sm:$0xff]  ;;  %v475_v35 = vpack.c.bf16 %v263_v34, %v262_v33  ;;  %v225_v38 = vsub.s32 0, %v224_v37  ;;  %v235_v41 = vsub.s32 1, %v224_v37  ;;  %v245_v44 = vsub.s32 2, %v224_v37  ;;  %s384_s16 = sshll.u32 %s521_s15, 4  ;;  %s385_s16 = int_to_ptr.vmem [resolvable:$true] %s384_s16 }
   0xc   :  { %465 = vmatprep.subr.bf16.mxu1 %v514_v3  ;;  %471 = vmatprep.subr.bf16.mxu0 %v514_v3  ;;  %v472_v32 = vpack.c.bf16 %v261_v31, %v260_v30  ;;  %v217_v40 = vld [vmem:[%s671_s5] sm:$0xf]  ;;  %v255_v46 = vsub.s32 3, %v224_v37  ;;  %v373_v12 = vsub.s32 %v370_v10, %v224_v37  ;;  %vm376_vm4 = vcmask 57344   ;;  %s494_s17 = scalar_lea.vmem %s385_s16, 32  ;;  %p495_p1 = scmp.lt.s32.totalorder %s385_s16, %s385_s16 }
   0xd   :  { %453 = vmatprep.mubr.msk.f32.mxu0 %vm515_vm0, %v516_v5  ;;  %240 = vperm.xlu1 %487, %v216_v20   ;;  %v226_v42 = vrot.slane %v217_v40, %v225_v38  ;;  %v236_v45 = vrot.slane %v217_v40, %v235_v41  ;;  %v394_v47 = vld [vmem:[%s672_s6] ss:$0 sm:$0xff]  ;;  %v246_v52 = vrot.slane %v217_v40, %v245_v44 }
   0xe   :  { %486 = vset.pattern.permute.xlu0 %v519_v23  ;;  %473 = vmatpush3.bf16.msra.mxu0 %v472_v32  ;;  %v256_v55 = vrot.slane %v217_v40, %v255_v46  ;;  %v357_v0 = vld [vmem:[#allocation2] sm:$0x1] }
   0xf   :  { %467 = vmatpush3.bf16.msra.mxu1 %v466_v16  ;;  %230 = vperm.xlu0 %486, %v216_v20   ;;  %v396_v1 = vld [vmem:[%s674_s8] ss:$0 sm:$0xff]  ;;  %s490_s8 = scalar_lea.vmem %s385_s16, 16 }
  0x10   :  { %468 = vmatprep.subr.bf16.mxu1 %v514_v3  ;;  %474 = vmatprep.subr.bf16.mxu0 %v514_v3  ;;  %v398_v5 = vld [vmem:[%s675_s9] ss:$0 sm:$0xff]  ;;  %p491_p0 = scmp.ne.s32.totalorder %s385_s16, %s490_s8  ;;  %p496_p2 = scmp.lt.s32.totalorder %s494_s17, %s490_s8 }
  0x11   :  { %488 = vset.pattern.permute.xlu1 %v520_v24 }
  0x12   :  { %250 = vperm.xlu1 %488, %v216_v20   ;;  %476 = vmatpush3.bf16.msra.mxu0 %v475_v35  ;;  %p497_p3 = por %p496_p2, %p495_p1 }
  0x13   :  { %470 = vmatpush3.bf16.msra.mxu1 %v469_v19  ;;  %489 = vset.pattern.permute.xlu0 %v517_v21 }
  0x14   :  { %360 = vperm.xlu0 %489, %v357_v0   ;;  %p498_p4 = pnand %p497_p3, %p491_p0 }
  0x89   :  { %v221_v39 = vpop.permute.xlu0 %220 }
  0x8a   :  { %v227_v49 = vmul.f32 %v226_v42, %v221_v39 }
  0x8c   :  { %v241_v43 = vpop.permute.xlu1 %240 }
  0x8d   :  { %v247_v58 = vmul.f32 %v246_v52, %v241_v43 }
  0x8e   :  { %v231_v48 = vpop.permute.xlu0 %230 }
  0x8f   :  { %v237_v54 = vmul.f32 %v236_v45, %v231_v48 }
  0x91   :  { %v251_v56 = vpop.permute.xlu1 %250 }
  0x92   :  { %v257_v60 = vmul.f32 %v256_v55, %v251_v56 }
  0x93   :  { %v361_v9 = vpop.permute.xlu0 %360 }
  0x94   :  { %v366_v11 = vrot.slane %v361_v9, %v225_v38 }
  0xde   :  { %v122_v26 = vpop.f32.mrb[0].mxu0 }
  0xdf   :  { %v123_v27 = vadd.f32 %v392_v25, %v122_v26  ;;  %v425_v28 = vpop.f32.mrb[1].mxu0 }
  0xe1   :  { %v126_v29 = vmax.f32 %v123_v27, 0.0 }
  0xe3   :  { %443 = vmatmul.mubr.msk.f32.vlgmr.msra.gmra.mrb[0].mxu1 %vm142_vm2, %v126_v29 }
 0x1b6   :  { %v212_v50 = vpop.f32.mrb[0].mxu1 }
 0x1b7   :  { %v213_v51 = vadd.f32 %v394_v47, %v212_v50  ;;  %v444_v53 = vpop.f32.mrb[1].mxu1 }
 0x1b9   :  { %v228_v57 = vadd.f32 %v227_v49, %v213_v51 }
 0x1bb   :  { %v238_v59 = vadd.f32 %v237_v54, %v228_v57 }
 0x1bd   :  { %v248_v61 = vadd.f32 %v247_v58, %v238_v59 }
 0x1bf   :  { %v258_v62 = vadd.f32 %v257_v60, %v248_v61 }
 0x1c1   :  { %v259_v63 = vmax.f32 %v258_v62, 0.0 }
 0x1c3   :  { %454 = vmatmul.mubr.msk.f32.vlgmr.msra.gmra.mrb[2].mxu0 %vm271_vm3, %v259_v63 }
 0x296   :  { %v341_v2 = vpop.f32.mrb[2].mxu0 }
 0x297   :  { %v342_v3 = vadd.f32 %v396_v1, %v341_v2  ;;  %v455_v4 = vpop.f32.mrb[3].mxu0 }
 0x299   :  { %v345_v6 = vmax.f32 %v342_v3, 0.0 }
 0x29b   :  { %v353_v7 = vmul.f32 %v398_v5, %v345_v6 }
 0x29d   :  { %v354_v8 = vsel %vm271_vm3, %v353_v7, 0.0 }
 0x29e   :  { %355 = vadd.xlane.f32.xlu1 %v354_v8 }
 0x32b   :  { %v356_v13 = vpop.xlane.xlu1 %355 }
 0x32c   :  { %v367_v14 = vadd.f32 %v366_v11, %v356_v13 }
 0x32e   :  { %v374_v15 = vrot.slane %v367_v14, %v373_v12 }
 0x330   :  { %377 = vst.msk [vmem:[#allocation3] sm:$0x1] %vm376_vm4, %v374_v15 }
 0x331   :  { %501 = shalt.err (!%p498_p4)
}
 0x332   :  { %s502_s0 = scalar_lea.hbm %s677_s11, 16 }
 0x333   :  { %p503_p5 = scmp.ne.s32.totalorder %s677_s11, %s502_s0  ;;  %p506_p6 = scmp.lt.u32.totalorder %s502_s0, %s677_s11 }
 0x335   :  { %p508_p7 = pnand %p506_p6, %p503_p5 }
 0x337   :  { %511 = shalt.err (!%p508_p7)
}
 0x338   :  { %387 = dma.vmem_to_hbm [thread:$0]  %s385_s16, 16, %s677_s11, [#allocation4]  }
 0x339   :  { %512 = dma.done.wait [#allocation4], 16  }
 0x33a   :  { %513 = vsyncadd [#allocation4], 4294967280 }
 0x33b   :  { %391 = vsyncpa [#allocation4], 1 }

</bundles_post_ra>
